<compile_context>
chip_gen: v5e
topology: v5e:2x2
jax: 0.10.0
libtpu: 0.0.40
codegen_flags: <defaults>
</compile_context>

<pallas_src>
import jax
import jax.numpy as jnp
from jax.experimental import pallas as pl
from jax.experimental.pallas import tpu as pltpu

_EPS = 1e-5  # nn.LayerNorm default eps


def _my_layernorm_kernel(x_ref, w_ref, b_ref, o_ref):
    # x_ref: (TB, L, C) tile; w_ref/b_ref: (1, C), broadcast over (TB, L).
    #
    # NOTE: when B % TB != 0 the final block is padded by Pallas; padded rows
    # produce garbage that is discarded on store.  Every reduction below is
    # over the C (last) or L (middle) axis only — never over the batch-tile
    # axis — so padding cannot leak into real rows.  Keep it that way.
    x = x_ref[...].astype(jnp.float32)                        # (TB, L, C)
    inv_c = 1.0 / x.shape[-1]

    # Single-pass channel statistics (sum & sum-of-squares): avoids keeping
    # `x - mean` live across two reductions.  f32 accumulation; clamp the
    # variance at 0 to guard against cancellation in E[x^2] - mean^2.
    mean = jnp.sum(x, axis=-1, keepdims=True) * inv_c         # (TB, L, 1)
    ex2 = jnp.sum(x * x, axis=-1, keepdims=True) * inv_c      # (TB, L, 1)
    var = jnp.maximum(ex2 - mean * mean, 0.0)
    inv = jax.lax.rsqrt(var + _EPS)

    x_hat = (x - mean) * inv * w_ref[...] + b_ref[...]        # (TB, L, C)

    # Autoformer "my_Layernorm": subtract the per-time-step mean over the
    # sequence axis, broadcast back over L.
    seq_mean = jnp.mean(x_hat, axis=1, keepdims=True)         # (TB, 1, C)
    o_ref[...] = (x_hat - seq_mean).astype(o_ref.dtype)


def _tpu_params():
    """Best-effort query of (per-core VMEM bytes, TensorCores per chip)."""
    vmem_cap = 64 << 20   # conservative default (v7x per-TC VMEM)
    num_cores = 1         # v5e / v6e: 1 TensorCore per chip
    try:
        info = pltpu.get_tpu_info()
        vmem_cap = int(getattr(info, "vmem_capacity_bytes", vmem_cap))
        num_cores = int(getattr(info, "num_cores", num_cores))
    except Exception:
        pass
    try:
        kind = jax.devices()[0].device_kind.lower()
        if "v7" in kind:  # v7x: 2 TensorCores per chip
            num_cores = max(num_cores, 2)
    except Exception:
        pass
    return vmem_cap, num_cores


def _pick_tb(B, L, C, itemsize, vmem_cap, num_cores):
    """Batch-tile size: big DMAs, bounded by VMEM, megacore-aware on v7x."""
    per_batch_io = max(1, L * C * itemsize)
    # Per-step tile target (input bytes).  v5e/v6e (128 MiB VMEM) can take
    # larger tiles than v7x (64 MiB).
    target_bytes = (12 << 20) if vmem_cap >= (96 << 20) else (6 << 20)
    tb = max(1, target_bytes // per_batch_io)

    # VMEM bound: 2x double-buffered input + 2x output tiles at I/O dtype,
    # plus ~3 full-tile f32 temporaries in the body, with headroom for
    # compiler-internal scratch.
    per_batch_vmem = L * C * (4 * itemsize + 3 * 4)
    usable = max(8 << 20, vmem_cap - (16 << 20))
    tb = min(tb, max(1, usable // per_batch_vmem))

    if num_cores >= 2 and B >= num_cores:
        # v7x only: make sure the parallel grid axis covers both TensorCores
        # and (when the batch allows) gives each core >= 2 pipeline steps.
        min_steps = num_cores * (2 if B >= 2 * num_cores else 1)
        tb = min(tb, max(1, B // min_steps))
        # Best effort: prefer a grid extent that is a multiple of the core
        # count (no tail-step imbalance), without shrinking the tile > 2x.
        for cand in range(int(tb), max(1, int(tb) // 2) - 1, -1):
            if pl.cdiv(B, cand) % num_cores == 0:
                tb = cand
                break

    return int(min(tb, B))


def my_layernorm(x, weight, bias):
    """x: (B, L, C); weight, bias: (C,). Returns (B, L, C) in x.dtype."""
    B, L, C = x.shape
    itemsize = jnp.dtype(x.dtype).itemsize
    w2 = weight.reshape(1, C).astype(jnp.float32)
    b2 = bias.reshape(1, C).astype(jnp.float32)

    vmem_cap, num_cores = _tpu_params()
    tb = _pick_tb(B, L, C, itemsize, vmem_cap, num_cores)
    grid = (pl.cdiv(B, tb),)

    # VMEM budget for this tiling: double-buffered in+out tiles at the I/O
    # dtype plus ~3 full-tile f32 temporaries, capped below physical VMEM
    # (headroom for compiler-internal scratch).
    tile_vmem = tb * L * C * (4 * itemsize + 3 * 4)
    vmem_limit = int(min(max(vmem_cap - (8 << 20), 16 << 20),
                         max(32 << 20, tile_vmem + (6 << 20))))

    # NOTE: output stores are lane-dense (unmasked vst) when C % 128 == 0;
    # Autoformer's d_model (e.g. 512) satisfies this.  Smaller raw C still
    # runs correctly, just with masked partial stores.
    return pl.pallas_call(
        _my_layernorm_kernel,
        out_shape=jax.ShapeDtypeStruct((B, L, C), x.dtype),
        grid_spec=pltpu.PrefetchScalarGridSpec(
            num_scalar_prefetch=0,
            grid=grid,
            in_specs=[
                pl.BlockSpec((tb, L, C), lambda b: (b, 0, 0)),  # x
                pl.BlockSpec((1, C), lambda b: (0, 0)),         # weight
                pl.BlockSpec((1, C), lambda b: (0, 0)),         # bias
            ],
            out_specs=pl.BlockSpec((tb, L, C), lambda b: (b, 0, 0)),
        ),
        compiler_params=pltpu.CompilerParams(
            dimension_semantics=("parallel",),
            vmem_limit_bytes=vmem_limit,
        ),
    )(x, w2, b2)


def _reference(x, weight, bias):
    xf = x.astype(jnp.float32)
    mean = jnp.mean(xf, axis=-1, keepdims=True)
    var = jnp.mean((xf - mean) ** 2, axis=-1, keepdims=True)
    x_hat = (xf - mean) / jnp.sqrt(var + _EPS) * weight + bias
    seq_mean = jnp.mean(x_hat, axis=1, keepdims=True)
    return (x_hat - seq_mean).astype(x.dtype)


if __name__ == "__main__":
    key = jax.random.PRNGKey(0)
    B, L, C = 4, 16, 128  # batch, seq_len, channels (C=128 -> lane-dense stores)

    x = jax.random.normal(key, (B, L, C), dtype=jnp.float32)

    # nn.LayerNorm(channels) default parameter init: weight=1, bias=0
    weight = jnp.ones((C,), dtype=jnp.float32)
    bias = jnp.zeros((C,), dtype=jnp.float32)

    out = my_layernorm(x, weight, bias)
    out = jax.block_until_ready(out)

    ref = _reference(x, weight, bias)
    assert out.shape == (B, L, C)
    assert jnp.allclose(out, ref, atol=1e-4, rtol=1e-4), "mismatch vs reference"

    # Also exercise the bf16 I/O path (kernel keeps stats in f32 internally).
    xb = x.astype(jnp.bfloat16)
    out_b = jax.block_until_ready(my_layernorm(xb, weight, bias))
    ref_b = _reference(xb, weight, bias)
    assert out_b.dtype == jnp.bfloat16
    assert jnp.allclose(out_b.astype(jnp.float32), ref_b.astype(jnp.float32),
                        atol=3e-2, rtol=3e-2), "bf16 mismatch vs reference"

    print("KERNEL_OK")
</pallas_src>

<mosaic_0001>
module attributes {stable_mosaic.version = 11 : i64} {
  func.func @_my_layernorm_kernel(%arg0: i32, %arg1: memref<4x16x128xf32, #tpu.memory_space<vmem>>, %arg2: memref<1x128xf32, #tpu.memory_space<vmem>>, %arg3: memref<1x128xf32, #tpu.memory_space<vmem>>, %arg4: memref<4x16x128xf32, #tpu.memory_space<vmem>>) attributes {dimension_semantics = [#tpu.dimension_semantics<parallel>], iteration_bounds = array<i64: 1>, scalar_prefetch = 0 : i64, scratch_operands = 0 : i64, tpu.core_type = #tpu.core_type<tc>, window_params = [{transform_indices = @transform_0, window_bounds = array<i64: 4, 16, 128>}, {pipeline_mode = #tpu.pipeline_mode<synchronous>, transform_indices = @transform_1, window_bounds = array<i64: 1, 128>}, {pipeline_mode = #tpu.pipeline_mode<synchronous>, transform_indices = @transform_2, window_bounds = array<i64: 1, 128>}, {transform_indices = @transform_3, window_bounds = array<i64: 4, 16, 128>}]} {
    %c0 = arith.constant 0 : index
    %c0_0 = arith.constant 0 : index
    %c0_1 = arith.constant 0 : index
    %0 = vector.load %arg1[%c0, %c0_0, %c0_1] : memref<4x16x128xf32, #tpu.memory_space<vmem>>, vector<4x16x128xf32>
    %cst = arith.constant dense<0.000000e+00> : vector<4x16xf32>
    %1 = vector.multi_reduction <add>, %0, %cst [2] : vector<4x16x128xf32> to vector<4x16xf32>
    %2 = vector.shape_cast %1 : vector<4x16xf32> to vector<4x16x1xf32>
    %cst_2 = arith.constant 7.812500e-03 : f32
    %3 = vector.broadcast %cst_2 : f32 to vector<4x16x1xf32>
    %4 = arith.mulf %2, %3 : vector<4x16x1xf32>
    %5 = arith.mulf %0, %0 : vector<4x16x128xf32>
    %cst_3 = arith.constant dense<0.000000e+00> : vector<4x16xf32>
    %6 = vector.multi_reduction <add>, %5, %cst_3 [2] : vector<4x16x128xf32> to vector<4x16xf32>
    %7 = vector.shape_cast %6 : vector<4x16xf32> to vector<4x16x1xf32>
    %cst_4 = arith.constant 7.812500e-03 : f32
    %8 = vector.broadcast %cst_4 : f32 to vector<4x16x1xf32>
    %9 = arith.mulf %7, %8 : vector<4x16x1xf32>
    %10 = arith.mulf %4, %4 : vector<4x16x1xf32>
    %11 = arith.subf %9, %10 : vector<4x16x1xf32>
    %cst_5 = arith.constant 0.000000e+00 : f32
    %12 = vector.broadcast %cst_5 : f32 to vector<4x16x1xf32>
    %13 = arith.maximumf %11, %12 : vector<4x16x1xf32>
    %cst_6 = arith.constant 9.99999974E-6 : f32
    %14 = vector.broadcast %cst_6 : f32 to vector<4x16x1xf32>
    %15 = arith.addf %13, %14 : vector<4x16x1xf32>
    %16 = math.rsqrt %15 : vector<4x16x1xf32>
    %17 = vector.broadcast %4 : vector<4x16x1xf32> to vector<4x16x128xf32>
    %18 = arith.subf %0, %17 : vector<4x16x128xf32>
    %19 = vector.broadcast %16 : vector<4x16x1xf32> to vector<4x16x128xf32>
    %20 = arith.mulf %18, %19 : vector<4x16x128xf32>
    %c0_7 = arith.constant 0 : index
    %c0_8 = arith.constant 0 : index
    %21 = vector.load %arg2[%c0_7, %c0_8] : memref<1x128xf32, #tpu.memory_space<vmem>>, vector<1x128xf32>
    %22 = vector.shape_cast %21 : vector<1x128xf32> to vector<1x1x128xf32>
    %23 = vector.broadcast %22 : vector<1x1x128xf32> to vector<4x16x128xf32>
    %24 = arith.mulf %20, %23 : vector<4x16x128xf32>
    %c0_9 = arith.constant 0 : index
    %c0_10 = arith.constant 0 : index
    %25 = vector.load %arg3[%c0_9, %c0_10] : memref<1x128xf32, #tpu.memory_space<vmem>>, vector<1x128xf32>
    %26 = vector.shape_cast %25 : vector<1x128xf32> to vector<1x1x128xf32>
    %27 = vector.broadcast %26 : vector<1x1x128xf32> to vector<4x16x128xf32>
    %28 = arith.addf %24, %27 : vector<4x16x128xf32>
    %cst_11 = arith.constant dense<0.000000e+00> : vector<4x128xf32>
    %29 = vector.multi_reduction <add>, %28, %cst_11 [1] : vector<4x16x128xf32> to vector<4x128xf32>
    %30 = vector.shape_cast %29 : vector<4x128xf32> to vector<4x1x128xf32>
    %cst_12 = arith.constant 1.600000e+01 : f32
    %31 = vector.broadcast %cst_12 : f32 to vector<4x1x128xf32>
    %32 = arith.divf %30, %31 : vector<4x1x128xf32>
    %33 = vector.broadcast %32 : vector<4x1x128xf32> to vector<4x16x128xf32>
    %34 = arith.subf %28, %33 : vector<4x16x128xf32>
    %c0_13 = arith.constant 0 : index
    %c0_14 = arith.constant 0 : index
    %c0_15 = arith.constant 0 : index
    %35 = vector.load %arg4[%c0_13, %c0_14, %c0_15] : memref<4x16x128xf32, #tpu.memory_space<vmem>>, vector<4x16x128xf32>
    tpu.vector_store %arg4[%c0_13, %c0_14, %c0_15], %34 {strides = array<i32>} : memref<4x16x128xf32, #tpu.memory_space<vmem>>, vector<4x16x128xf32>,
    return
  }
  func.func @transform_0(%arg0: i32) -> (i32, i32, i32) {
    %c0_i32 = arith.constant 0 : i32
    %c0_i32_0 = arith.constant 0 : i32
    %c0_i32_1 = arith.constant 0 : i32
    return %arg0, %c0_i32, %c0_i32_0 : i32, i32, i32
  }
  func.func @transform_1(%arg0: i32) -> (i32, i32) {
    %c0_i32 = arith.constant 0 : i32
    %c0_i32_0 = arith.constant 0 : i32
    %c0_i32_1 = arith.constant 0 : i32
    return %c0_i32, %c0_i32_0 : i32, i32
  }
  func.func @transform_2(%arg0: i32) -> (i32, i32) {
    %c0_i32 = arith.constant 0 : i32
    %c0_i32_0 = arith.constant 0 : i32
    %c0_i32_1 = arith.constant 0 : i32
    return %c0_i32, %c0_i32_0 : i32, i32
  }
  func.func @transform_3(%arg0: i32) -> (i32, i32, i32) {
    %c0_i32 = arith.constant 0 : i32
    %c0_i32_0 = arith.constant 0 : i32
    %c0_i32_1 = arith.constant 0 : i32
    return %arg0, %c0_i32, %c0_i32_0 : i32, i32, i32
  }
}

</mosaic_0001>

<bundles_post_ra>
// kernel: tpu_custom_call.1
= control target key start
LH: loop header
LB: loop body
LE: loop exit
PB: predicated region body
PF: predicated region fallthrough
CT: control target
= control target key end

     0   :  { %8 = vsyncpa [#allocation3], 0  ;;  %s680_s0 = inlined_call_operand.hbm [shape: f32[4,16,128], index: 0, kind: input, shape index: {}]   ;;  %s681_s1 = inlined_call_operand.hbm [shape: f32[1,128], index: 1, kind: input, shape index: {}]   ;;  %s682_s2 = inlined_call_operand.vmem [shape: f32[1,128], index: 2, kind: input, shape index: {}]   ;;  %s683_s3 = inlined_call_operand.hbm [shape: f32[4,16,128], index: 3, kind: output, shape index: {}]  }
   0x1   :  { %9 = vsyncpa [#allocation6], 0 }
   0x2   :  { %10 = vsyncpa [#allocation4], 0  ;;  %s15_s14 = sshll.u32 %s680_s0, 4  ;;  %s440_s15 = smov [#allocation2]   ;;  %s16_s14 = int_to_ptr.hbm [resolvable:$true] %s15_s14 }
   0x3   :  { %s17_s16 = sshll.u32 %s440_s15, 4  ;;  %s29_s19 = sshll.u32 %s681_s1, 4  ;;  %s18_s16 = int_to_ptr.vmem [resolvable:$true] %s17_s16  ;;  %s30_s19 = int_to_ptr.hbm [resolvable:$true] %s29_s19 }
   0x4   :  { %s441_s20 = smov 128   ;;  %s442_s21 = smov 8  }
   0x5   :  { %23 = dma.hbm_to_vmem [thread:$0]  %s16_s14, 1024, %s18_s16, [#allocation3], %s441_s20, %s441_s20, %s442_s21  }
   0x6   :  { %s443_s22 = smov [#allocation5]  }
   0x7   :  { %s31_s23 = sshll.u32 %s443_s22, 4  ;;  %s32_s23 = int_to_ptr.vmem [resolvable:$true] %s31_s23 }
   0x8   :  { %34 = dma.hbm_to_vmem [thread:$0]  %s30_s19, 16, %s32_s23, [#allocation6]  }
   0x9   :  { %434 = dma.done.wait [#allocation3], 1024  }
   0xa   :  { %435 = vsyncadd [#allocation3], 4294966272 }
   0xb   :  { %436 = dma.done.wait [#allocation6], 16  }
   0xc   :  { %437 = vsyncadd [#allocation6], 4294967280  ;;  %v475_v0 = vld [vmem:[#allocation2 + $0x20] sm:$0xff]  ;;  %v477_v1 = vld [vmem:[#allocation2 + $0x10] sm:$0xff]  ;;  %s322_s27 = sshll.u32 %s683_s3, 4  ;;  %s323_s27 = int_to_ptr.hbm [resolvable:$true] %s322_s27 }
   0xd   :  { %v479_v2 = vld [vmem:[#allocation2] sm:$0xff]  ;;  %61 = vadd.xlane.f32.xlu2 %v475_v0  ;;  %57 = vadd.xlane.f32.xlu1 %v477_v1  ;;  %v484_v3 = vld [vmem:[#allocation2 + $0x28] sm:$0xff]  ;;  %v486_v4 = vld [vmem:[#allocation2 + $0x18] sm:$0xff]  ;;  %v79_v9 = vmul.f32 %v477_v1, %v477_v1  ;;  %v81_v14 = vmul.f32 %v475_v0, %v475_v0 }
   0xe   :  { %53 = vadd.xlane.f32.xlu0 %v479_v2  ;;  %v488_v5 = vld [vmem:[#allocation2 + $0x8] sm:$0xff]  ;;  %v77_v6 = vmul.f32 %v479_v2, %v479_v2  ;;  %v495_v7 = vld [vmem:[#allocation2 + $0x38] sm:$0xff]  ;;  %v497_v8 = vld [vmem:[#allocation2 + $0x30] sm:$0xff]  ;;  %v80_v10 = vmul.f32 %v486_v4, %v486_v4  ;;  %v82_v12 = vmul.f32 %v484_v3, %v484_v3 }
   0xf   :  { %v78_v11 = vmul.f32 %v488_v5, %v488_v5  ;;  %v83_v13 = vmul.f32 %v497_v8, %v497_v8  ;;  %v84_v15 = vmul.f32 %v495_v7, %v495_v7 }
  0x15   :  { %63 = vadd.xlane.f32.xlu2 %v484_v3  ;;  %59 = vadd.xlane.f32.xlu1 %v486_v4 }
  0x16   :  { %55 = vadd.xlane.f32.xlu0 %v488_v5 }
  0x1d   :  { %67 = vadd.xlane.f32.xlu1 %v495_v7  ;;  %85 = vadd.xlane.f32.xlu2 %v77_v6 }
  0x1e   :  { %65 = vadd.xlane.f32.xlu0 %v497_v8 }
  0x25   :  { %89 = vadd.xlane.f32.xlu1 %v79_v9  ;;  %91 = vadd.xlane.f32.xlu2 %v80_v10 }
  0x26   :  { %87 = vadd.xlane.f32.xlu0 %v78_v11 }
  0x2d   :  { %95 = vadd.xlane.f32.xlu1 %v82_v12  ;;  %97 = vadd.xlane.f32.xlu2 %v83_v13 }
  0x2e   :  { %93 = vadd.xlane.f32.xlu0 %v81_v14 }
  0x36   :  { %99 = vadd.xlane.f32.xlu0 %v84_v15 }
  0x80   :  { %v62_v16 = vpop.xlane.xlu2 %61  ;;  %v58_v17 = vpop.xlane.xlu1 %57 }
  0x81   :  { %v54_v18 = vpop.xlane.xlu0 %53  ;;  %v521_v29 = vmul.f32 0.0078125, %v58_v17  ;;  %v536_v46 = vmul.f32 0.0078125, %v62_v16 }
  0x82   :  { %v515_v22 = vmul.f32 0.0078125, %v54_v18  ;;  %v444_v18 = vmov 16.0  }
  0x83   :  { %v111_v34 = vmul.f32 %v521_v29, %v521_v29  ;;  %v113_v59 = vmul.f32 %v536_v46, %v536_v46 }
  0x84   :  { %v109_v25 = vmul.f32 %v515_v22, %v515_v22 }
  0x88   :  { %v64_v19 = vpop.xlane.xlu2 %63  ;;  %v60_v20 = vpop.xlane.xlu1 %59 }
  0x89   :  { %v56_v21 = vpop.xlane.xlu0 %55  ;;  %v523_v30 = vmul.f32 0.0078125, %v60_v20  ;;  %v538_v49 = vmul.f32 0.0078125, %v64_v19 }
  0x8a   :  { %v525_v32 = vmul.f32 0.0078125, %v56_v21 }
  0x8b   :  { %v112_v37 = vmul.f32 %v523_v30, %v523_v30  ;;  %v114_v61 = vmul.f32 %v538_v49, %v538_v49 }
  0x8c   :  { %v110_v41 = vmul.f32 %v525_v32, %v525_v32 }
  0x90   :  { %v517_v23 = vpop.xlane.xlu1 %67  ;;  %v86_v24 = vpop.xlane.xlu2 %85 }
  0x91   :  { %v66_v26 = vpop.xlane.xlu0 %65  ;;  %v101_v27 = vmul.f32 0.0078125, %v86_v24 }
  0x92   :  { %v542_v52 = vmul.f32 0.0078125, %v66_v26 }
  0x93   :  { %v117_v28 = vsub.f32 %v101_v27, %v109_v25 }
  0x94   :  { %v115_v6 = vmul.f32 %v542_v52, %v542_v52 }
  0x95   :  { %v125_v31 = vmax.f32 %v117_v28, 0.0 }
  0x97   :  { %v527_v33 = vadd.f32 1e-05, %v125_v31 }
  0x98   :  { %v90_v35 = vpop.xlane.xlu1 %89  ;;  %v92_v36 = vpop.xlane.xlu2 %91 }
  0x99   :  { %344 = vrsqrt.f32 %v527_v33  ;;  %v103_v38 = vmul.f32 0.0078125, %v90_v35  ;;  %v88_v39 = vpop.xlane.xlu0 %87  ;;  %v104_v40 = vmul.f32 0.0078125, %v92_v36  ;;  %v223_v35 = vsub.f32 %v477_v1, %v521_v29 }
  0x9a   :  { %v102_v42 = vmul.f32 0.0078125, %v88_v39  ;;  %vm147_vm1 = vweird.f32 %v527_v33  ;;  %v579_v39 = vmul.f32 0.0078125, %v517_v23  ;;  %v222_v23 = vsub.f32 %v488_v5, %v525_v32 }
  0x9b   :  { %v119_v43 = vsub.f32 %v103_v38, %v111_v34  ;;  %v120_v44 = vsub.f32 %v104_v40, %v112_v37  ;;  %v221_v38 = vsub.f32 %v479_v2, %v515_v22  ;;  %v224_v22 = vsub.f32 %v486_v4, %v523_v30 }
  0x9c   :  { %v118_v45 = vsub.f32 %v102_v42, %v110_v41 }
  0x9d   :  { %v127_v47 = vmax.f32 %v119_v43, 0.0  ;;  %v128_v48 = vmax.f32 %v120_v44, 0.0 }
  0x9e   :  { %v126_v50 = vmax.f32 %v118_v45, 0.0 }
  0x9f   :  { %v540_v51 = vpop.eup %344  ;;  %v544_v53 = vadd.f32 1e-05, %v127_v47  ;;  %v546_v54 = vadd.f32 1e-05, %v128_v48  ;;  %v116_v48 = vmul.f32 %v579_v39, %v579_v39 }
  0xa0   :  { %v142_v55 = vmul.f32 %v540_v51, %v527_v33  ;;  %v550_v56 = vadd.f32 1e-05, %v126_v50  ;;  %v96_v57 = vpop.xlane.xlu1 %95  ;;  %v98_v58 = vpop.xlane.xlu2 %97  ;;  %vm148_vm0 = vweird.f32 %v540_v51  ;;  %v599_v50 = vld [vmem:[#allocation5] ss:$0 sm:$0xff] }
  0xa1   :  { %346 = vrsqrt.f32 %v544_v53  ;;  %v94_v60 = vpop.xlane.xlu0 %93  ;;  %v106_v63 = vmul.f32 0.0078125, %v96_v57  ;;  %v107_v10 = vmul.f32 0.0078125, %v98_v58  ;;  %vm581_vm2 = vmor %vm147_vm1, %vm148_vm0  ;;  %vm167_vm5 = vweird.f32 %v544_v53 }
  0xa2   :  { %v143_v62 = vmul.f32 %v540_v51, %v142_v55  ;;  %348 = vrsqrt.f32 %v550_v56  ;;  %v105_v9 = vmul.f32 0.0078125, %v94_v60  ;;  %vm157_vm8 = vweird.f32 %v550_v56 }
  0xa3   :  { %350 = vrsqrt.f32 %v546_v54  ;;  %v122_v12 = vsub.f32 %v106_v63, %v114_v61  ;;  %v123_v14 = vsub.f32 %v107_v10, %v115_v6  ;;  %vm177_vm9 = vweird.f32 %v546_v54 }
  0xa4   :  { %v144_v11 = vmul.f32 0.5, %v143_v62  ;;  %v121_v13 = vsub.f32 %v105_v9, %v113_v59  ;;  %352 = vrcp.f32 %v444_v18 }
  0xa5   :  { %v130_v16 = vmax.f32 %v122_v12, 0.0  ;;  %v131_v20 = vmax.f32 %v123_v14, 0.0 }
  0xa6   :  { %v145_v15 = vsub.f32 1.5, %v144_v11  ;;  %v129_v19 = vmax.f32 %v121_v13, 0.0 }
  0xa7   :  { %v347_v17 = vpop.eup %346  ;;  %v565_v26 = vadd.f32 1e-05, %v130_v16  ;;  %v570_v34 = vadd.f32 1e-05, %v131_v20 }
  0xa8   :  { %v349_v21 = vpop.eup %348  ;;  %v146_v24 = vmul.f32 %v540_v51, %v145_v15  ;;  %v162_v25 = vmul.f32 %v347_v17, %v544_v53  ;;  %v568_v31 = vadd.f32 1e-05, %v129_v19  ;;  %vm168_vm3 = vweird.f32 %v347_v17  ;;  %v611_v53 = vld [vmem:[%s682_s2] ss:$0 sm:$0xff]  ;;  %s445_s2 = smov [#allocation7]  }
  0xa9   :  { %v351_v27 = vpop.eup %350  ;;  %v152_v28 = vmul.f32 %v349_v21, %v550_v56  ;;  %354 = vrsqrt.f32 %v565_v26  ;;  %v100_v42 = vpop.xlane.xlu0 %99  ;;  %vm158_vm4 = vweird.f32 %v349_v21  ;;  %vm169_vm7 = vmor %vm167_vm5, %vm168_vm3  ;;  %vm197_vm14 = vweird.f32 %v565_v26  ;;  %s320_s24 = sshll.u32 %s445_s2, 4  ;;  %s321_s24 = int_to_ptr.vmem [resolvable:$true] %s320_s24 }
  0xaa   :  { %v163_v36 = vmul.f32 %v347_v17, %v162_v25  ;;  %v172_v37 = vmul.f32 %v351_v27, %v546_v54  ;;  %v150_v1 = vsel %vm581_vm2, %v540_v51, %v146_v24  ;;  %356 = vrsqrt.f32 %v568_v31  ;;  %v590_v2 = vpop.eup %352  ;;  %vm159_vm10 = vmor %vm157_vm8, %vm158_vm4 }
  0xab   :  { %v153_v41 = vmul.f32 %v349_v21, %v152_v28  ;;  %358 = vrsqrt.f32 %v570_v34  ;;  %v108_v47 = vmul.f32 0.0078125, %v100_v42  ;;  %v229_v51 = vmul.f32 %v221_v38, %v150_v1 }
  0xac   :  { %v164_v29 = vmul.f32 0.5, %v163_v36  ;;  %v173_v33 = vmul.f32 %v351_v27, %v172_v37  ;;  %vm178_vm6 = vweird.f32 %v351_v27  ;;  %v290_v30 = vmul.f32 16.0, %v590_v2 }
  0xad   :  { %v154_v43 = vmul.f32 0.5, %v153_v41  ;;  %v124_v62 = vsub.f32 %v108_v47, %v116_v48  ;;  %v241_v6 = vmul.f32 %v599_v50, %v229_v51  ;;  %vm179_vm11 = vmor %vm177_vm9, %vm178_vm6  ;;  %vm187_vm0 = vweird.f32 %v568_v31 }
  0xae   :  { %v165_v44 = vsub.f32 1.5, %v164_v29  ;;  %v174_v45 = vmul.f32 0.5, %v173_v33  ;;  %v291_v15 = vsub.f32 1.0, %v290_v30  ;;  %v226_v29 = vsub.f32 %v484_v3, %v538_v49 }
  0xaf   :  { %v155_v55 = vsub.f32 1.5, %v154_v43  ;;  %v355_v5 = vpop.eup %354  ;;  %v622_v24 = vadd.f32 %v611_v53, %v241_v6  ;;  %vm294_vm3 = vweird.f32 %v590_v2  ;;  %vm207_vm4 = vweird.f32 %v570_v34 }
  0xb0   :  { %v166_v57 = vmul.f32 %v347_v17, %v165_v44  ;;  %v175_v4 = vsub.f32 1.5, %v174_v45  ;;  %v357_v58 = vpop.eup %356  ;;  %v192_v61 = vmul.f32 %v355_v5, %v565_v26  ;;  %vm198_vm12 = vweird.f32 %v355_v5 }
  0xb1   :  { %v156_v32 = vmul.f32 %v349_v21, %v155_v55  ;;  %v606_v63 = vpop.eup %358  ;;  %v182_v54 = vmul.f32 %v357_v58, %v568_v31  ;;  %vm188_vm13 = vweird.f32 %v357_v58  ;;  %vm199_vm15 = vmor %vm197_vm14, %vm198_vm12  ;;  %v292_v43 = vmul.f32 %v590_v2, %v291_v15 }
  0xb2   :  { %v170_v59 = vsel %vm169_vm7, %v347_v17, %v166_v57  ;;  %v176_v60 = vmul.f32 %v351_v27, %v175_v4  ;;  %v193_v12 = vmul.f32 %v355_v5, %v192_v61  ;;  %v202_v13 = vmul.f32 %v606_v63, %v570_v34  ;;  %vm189_vm1 = vmor %vm187_vm0, %vm188_vm13 }
  0xb3   :  { %v231_v9 = vmul.f32 %v223_v35, %v170_v59  ;;  %v160_v56 = vsel %vm159_vm10, %v349_v21, %v156_v32  ;;  %v183_v17 = vmul.f32 %v357_v58, %v182_v54  ;;  %v132_v21 = vmax.f32 %v124_v62, 0.0 }
  0xb4   :  { %v230_v10 = vmul.f32 %v222_v23, %v160_v56  ;;  %v180_v11 = vsel %vm179_vm11, %v351_v27, %v176_v60  ;;  %v194_v19 = vmul.f32 0.5, %v193_v12  ;;  %v203_v20 = vmul.f32 %v606_v63, %v202_v13 }
  0xb5   :  { %v243_v14 = vmul.f32 %v599_v50, %v231_v9  ;;  %v232_v16 = vmul.f32 %v224_v22, %v180_v11  ;;  %v184_v28 = vmul.f32 0.5, %v183_v17  ;;  %v631_v37 = vadd.f32 1e-05, %v132_v21 }
  0xb6   :  { %v242_v18 = vmul.f32 %v599_v50, %v230_v10  ;;  %v195_v36 = vsub.f32 1.5, %v194_v19  ;;  %v204_v41 = vmul.f32 0.5, %v203_v20  ;;  %v225_v23 = vsub.f32 %v475_v0, %v536_v46 }
  0xb7   :  { %v625_v25 = vadd.f32 %v611_v53, %v243_v14  ;;  %v244_v27 = vmul.f32 %v599_v50, %v232_v16  ;;  %v185_v40 = vsub.f32 1.5, %v184_v28  ;;  %360 = vrsqrt.f32 %v631_v37 }
  0xb8   :  { %v629_v35 = vadd.f32 %v611_v53, %v242_v18  ;;  %v196_v1 = vmul.f32 %v355_v5, %v195_v36  ;;  %v205_v3 = vsub.f32 1.5, %v204_v41  ;;  %v293_v31 = vadd.f32 %v590_v2, %v292_v43 }
  0xb9   :  { %v634_v38 = vadd.f32 %v611_v53, %v244_v27  ;;  %v186_v22 = vmul.f32 %v357_v58, %v185_v40  ;;  %vm208_vm2 = vweird.f32 %v606_v63  ;;  %v227_v12 = vsub.f32 %v497_v8, %v542_v52 }
  0xba   :  { %v261_v42 = vadd.f32 %v629_v35, %v622_v24  ;;  %v200_v45 = vsel %vm199_vm15, %v355_v5, %v196_v1  ;;  %v206_v32 = vmul.f32 %v606_v63, %v205_v3  ;;  %vm209_vm5 = vmor %vm207_vm4, %vm208_vm2  ;;  %v295_v56 = vsel %vm294_vm3, %v590_v2, %v293_v31 }
  0xbb   :  { %v268_v33 = vadd.f32 %v634_v38, %v625_v25  ;;  %v234_v47 = vmul.f32 %v226_v29, %v200_v45  ;;  %v190_v48 = vsel %vm189_vm1, %v357_v58, %v186_v22  ;;  %vm217_vm7 = vweird.f32 %v631_v37 }
  0xbc   :  { %v262_v44 = vrot.slane %v261_v42, 4  ;;  %v233_v51 = vmul.f32 %v225_v23, %v190_v48  ;;  %v210_v10 = vsel %vm209_vm5, %v606_v63, %v206_v32  ;;  %v228_v2 = vsub.f32 %v495_v7, %v579_v39 }
  0xbd   :  { %v269_v26 = vrot.slane %v268_v33, 4  ;;  %v246_v57 = vmul.f32 %v599_v50, %v234_v47  ;;  %v361_v4 = vpop.eup %360  ;;  %v235_v18 = vmul.f32 %v227_v12, %v210_v10 }
  0xbe   :  { %v263_v49 = vadd.f32 %v262_v44, %v261_v42  ;;  %v245_v0 = vmul.f32 %v599_v50, %v233_v51  ;;  %v212_v58 = vmul.f32 %v361_v4, %v631_v37  ;;  %vm218_vm6 = vweird.f32 %v361_v4 }
  0xbf   :  { %v270_v55 = vadd.f32 %v269_v26, %v268_v33  ;;  %v258_v5 = vadd.f32 %v611_v53, %v246_v57  ;;  %vm219_vm8 = vmor %vm217_vm7, %vm218_vm6  ;;  %v247_v40 = vmul.f32 %v599_v50, %v235_v18 }
  0xc0   :  { %v264_v30 = vrot.slane %v263_v49, 2  ;;  %v257_v60 = vadd.f32 %v611_v53, %v245_v0  ;;  %v213_v62 = vmul.f32 %v361_v4, %v212_v58 }
  0xc1   :  { %v271_v46 = vrot.slane %v270_v55, 2 }
  0xc2   :  { %v265_v59 = vadd.f32 %v264_v30, %v263_v49  ;;  %v275_v9 = vadd.f32 %v258_v5, %v257_v60  ;;  %v214_v11 = vmul.f32 0.5, %v213_v62 }
  0xc3   :  { %v272_v61 = vadd.f32 %v271_v46, %v270_v55 }
  0xc4   :  { %v266_v6 = vrot.slane %v265_v59, 1  ;;  %v276_v14 = vrot.slane %v275_v9, 4  ;;  %v215_v16 = vsub.f32 1.5, %v214_v11 }
  0xc5   :  { %v273_v54 = vrot.slane %v272_v61, 1 }
  0xc6   :  { %v267_v13 = vadd.f32 %v266_v6, %v265_v59  ;;  %v277_v34 = vadd.f32 %v276_v14, %v275_v9  ;;  %v216_v20 = vmul.f32 %v361_v4, %v215_v16 }
  0xc7   :  { %v274_v15 = vadd.f32 %v273_v54, %v272_v61 }
  0xc8   :  { %v296_v17 = vmul.f32 %v295_v56, %v267_v13  ;;  %v278_v8 = vrot.slane %v277_v34, 2  ;;  %v220_v28 = vsel %vm219_vm8, %v361_v4, %v216_v20 }
  0xc9   :  { %v297_v19 = vmul.f32 %v295_v56, %v274_v15  ;;  %v236_v41 = vmul.f32 %v228_v2, %v220_v28 }
  0xca   :  { %v300_v63 = vsub.f32 %v622_v24, %v296_v17  ;;  %v301_v21 = vsub.f32 %v629_v35, %v296_v17  ;;  %v279_v36 = vadd.f32 %v278_v8, %v277_v34  ;;  %v259_v24 = vadd.f32 %v611_v53, %v247_v40 }
  0xcb   :  { %v302_v52 = vsub.f32 %v625_v25, %v297_v19  ;;  %v303_v27 = vsub.f32 %v634_v38, %v297_v19  ;;  %v248_v7 = vmul.f32 %v599_v50, %v236_v41 }
  0xcc   :  { %308 = vst [vmem:[#allocation7] sm:$0xff] %v300_v63  ;;  %v280_v37 = vrot.slane %v279_v36, 1 }
  0xcd   :  { %309 = vst [vmem:[#allocation7 + $0x8] sm:$0xff] %v301_v21  ;;  %v260_v35 = vadd.f32 %v611_v53, %v248_v7 }
  0xce   :  { %310 = vst [vmem:[#allocation7 + $0x10] sm:$0xff] %v302_v52  ;;  %v281_v39 = vadd.f32 %v280_v37, %v279_v36 }
  0xcf   :  { %311 = vst [vmem:[#allocation7 + $0x18] sm:$0xff] %v303_v27  ;;  %v282_v42 = vadd.f32 %v260_v35, %v259_v24 }
  0xd0   :  { %v298_v25 = vmul.f32 %v295_v56, %v281_v39 }
  0xd1   :  { %v283_v29 = vrot.slane %v282_v42, 4 }
  0xd2   :  { %v304_v38 = vsub.f32 %v257_v60, %v298_v25  ;;  %v305_v1 = vsub.f32 %v258_v5, %v298_v25 }
  0xd3   :  { %v284_v33 = vadd.f32 %v283_v29, %v282_v42 }
  0xd4   :  { %312 = vst [vmem:[#allocation7 + $0x20] sm:$0xff] %v304_v38 }
  0xd5   :  { %313 = vst [vmem:[#allocation7 + $0x28] sm:$0xff] %v305_v1  ;;  %v285_v22 = vrot.slane %v284_v33, 2 }
  0xd7   :  { %v286_v23 = vadd.f32 %v285_v22, %v284_v33 }
  0xd9   :  { %v287_v43 = vrot.slane %v286_v23, 1 }
  0xdb   :  { %v288_v44 = vadd.f32 %v287_v43, %v286_v23 }
  0xdd   :  { %v299_v45 = vmul.f32 %v295_v56, %v288_v44 }
  0xdf   :  { %v306_v50 = vsub.f32 %v259_v24, %v299_v45  ;;  %v307_v53 = vsub.f32 %v260_v35, %v299_v45 }
  0xe1   :  { %314 = vst [vmem:[#allocation7 + $0x30] sm:$0xff] %v306_v50 }
  0xe2   :  { %315 = vst [vmem:[#allocation7 + $0x38] sm:$0xff] %v307_v53 }
  0xe3   :  { %328 = dma.vmem_to_hbm [thread:$0]  %s321_s24, 1024, %s323_s27, [#allocation4], %s441_s20, %s441_s20, %s442_s21  }
  0xe4   :  { %438 = dma.done.wait [#allocation4], 1024  }
  0xe5   :  { %439 = vsyncadd [#allocation4], 4294966272 }
  0xe6   :  { %333 = vsyncpa [#allocation3], 1 }
  0xe7   :  { %334 = vsyncpa [#allocation6], 1 }
  0xe8   :  { %335 = vsyncpa [#allocation4], 1 }

</bundles_post_ra>
